<compile_context>
chip_gen: v5e
topology: v5e:2x2
jax: 0.10.0
libtpu: 0.0.40
codegen_flags: <defaults>
</compile_context>

<pallas_src>
import jax
import jax.numpy as jnp
from jax.experimental import pallas as pl
from jax.experimental.pallas import tpu as pltpu


# ----------------------------- kernels --------------------------------------


def _linear_kernel_single(x_ref, w_ref, b_ref, o_ref):
    # Whole K in one block: one MXU pass per (i, j) tile; bias folded into the
    # single lane-dense store. x is cast to the weight dtype in-kernel so the
    # wrapper never makes an extra HBM pass over either operand.
    acc = jnp.dot(
        x_ref[...].astype(w_ref.dtype),
        w_ref[...],
        preferred_element_type=jnp.float32,
    )
    o_ref[...] = (acc + b_ref[...].astype(jnp.float32)).astype(o_ref.dtype)


def _linear_kernel_reduce(x_ref, w_ref, b_ref, o_ref, acc_ref):
    # Fallback for large K: K tiled as the innermost ("arbitrary") reduction.
    k = pl.program_id(2)

    @pl.when(k == 0)
    def _():
        acc_ref[...] = jnp.zeros_like(acc_ref)

    acc_ref[...] += jnp.dot(
        x_ref[...].astype(w_ref.dtype),
        w_ref[...],
        preferred_element_type=jnp.float32,
    )

    @pl.when(k == pl.num_programs(2) - 1)
    def _():
        o_ref[...] = (acc_ref[...] + b_ref[...].astype(jnp.float32)).astype(
            o_ref.dtype
        )


# ----------------------------- wrapper ---------------------------------------


def _default_vmem_limit_bytes():
    # Generation-aware scoped-VMEM limit: keep ~half the physical VMEM for
    # Mosaic internal scratch / pipelining headroom.
    #   v5e/v6e: 128 MiB physical -> 64 MiB ;  v7x: 64 MiB physical -> 32 MiB.
    try:
        cap = int(pltpu.get_tpu_info().vmem_capacity_bytes)
        return max(16 * 1024 * 1024, min(cap // 2, 64 * 1024 * 1024))
    except Exception:
        return 32 * 1024 * 1024


def _vmem_footprint(tm, tn, tk, n_k, x_bytes, w_bytes, out_bytes, w_bufs):
    est = 2 * tm * tk * x_bytes        # double-buffered x tiles
    est += w_bufs * tk * tn * w_bytes  # (multi-)buffered weight tiles
    est += 2 * tm * tn * out_bytes     # double-buffered output tiles
    est += 2 * tn * 4                  # bias tile (f32)
    if n_k > 1:
        est += tm * tn * 4             # f32 accumulator scratch
    return est


def linear_pallas(
    x,
    w_t,
    b,
    *,
    tm=None,
    tn=None,
    tk=None,
    out_dtype=None,
    vmem_limit_bytes=None,
    weight_buffers=2,
):
    """y = x @ w_t + b  with x: [M, K], w_t: [K, N] (= nn.Linear weight.T), b: [N].

    For best performance pass w_t already in bf16 (cast once at param init,
    outside the hot path). The kernel casts x tiles to the weight dtype
    in-kernel and accumulates in f32 on the MXU.
    """
    M, K = x.shape
    K2, N = w_t.shape
    assert K == K2 and b.shape == (N,), (x.shape, w_t.shape, b.shape)
    out_dtype = out_dtype if out_dtype is not None else x.dtype

    if vmem_limit_bytes is None:
        vmem_limit_bytes = _default_vmem_limit_bytes()

    # ---- tile defaults ------------------------------------------------------
    # tm: match the 256-wide v6e/v7x MXU for large M (also fine on v5e).
    if tm is None:
        if M <= 256:
            tm = M
        elif M % 256 == 0:
            tm = 256
        elif M % 128 == 0:
            tm = 128
        else:
            tm = M
    # tn: keep >=2 lane-dense N tiles when possible so (a) both of v7x's
    # TensorCores get work and (b) tile j+1's weight DMA overlaps tile j's
    # matmul + store instead of being fully exposed.
    if tn is None:
        if N % 256 == 0 and N > 256:
            tn = 256
        elif N <= 512:
            tn = N
        elif N % 128 == 0:
            tn = 128
        else:
            tn = N
    # tk: big K tiles amortize the ~0.35 us/step grid overhead; single block
    # when K fits (no accumulator, no pl.when).
    if tk is None:
        if K <= 2048:
            tk = K
        elif K % 2048 == 0:
            tk = 2048
        elif K % 1024 == 0:
            tk = 1024
        else:
            tk = K
    assert M % tm == 0 and N % tn == 0 and K % tk == 0, (M, N, K, tm, tn, tk)

    x_bytes = jnp.dtype(x.dtype).itemsize
    w_bytes = jnp.dtype(w_t.dtype).itemsize
    out_bytes = jnp.dtype(out_dtype).itemsize

    # Shrink K (then N) tiles until the buffered footprint fits the scoped-VMEM
    # limit we actually hand to the compiler.
    def _fits(tk_, tn_):
        n_k_ = K // tk_
        wb = max(2, weight_buffers) if n_k_ > 1 else 2
        return (
            _vmem_footprint(tm, tn_, tk_, n_k_, x_bytes, w_bytes, out_bytes, wb)
            < vmem_limit_bytes
        )

    while not _fits(tk, tn) and tk % 2 == 0 and tk > 256:
        tk //= 2
    while not _fits(tk, tn) and tn % 2 == 0 and tn > 128:
        tn //= 2
    assert _fits(tk, tn), (
        "tile footprint exceeds scoped VMEM limit",
        tm, tn, tk, vmem_limit_bytes,
    )
    n_k = K // tk

    b2d = b.reshape(1, N).astype(jnp.float32)  # lane-dense (1, N) bias tile

    cost = pl.CostEstimate(
        flops=2 * M * K * N,
        transcendentals=0,
        bytes_accessed=M * K * x_bytes + K * N * w_bytes + M * N * out_bytes + N * 4,
    )

    if n_k == 1:
        grid_spec = pltpu.PrefetchScalarGridSpec(
            num_scalar_prefetch=0,
            grid=(M // tm, N // tn),
            in_specs=[
                pl.BlockSpec((tm, tk), lambda i, j: (i, 0)),
                pl.BlockSpec((tk, tn), lambda i, j: (0, j)),
                pl.BlockSpec((1, tn), lambda i, j: (0, j)),
            ],
            out_specs=pl.BlockSpec((tm, tn), lambda i, j: (i, j)),
        )
        kernel = _linear_kernel_single
        dim_sem = ("parallel", "parallel")
    else:
        w_spec_kwargs = {}
        if weight_buffers and weight_buffers > 2:
            # Deeper weight buffering hides DMA tail latency on short tiles.
            w_spec_kwargs = dict(pipeline_mode=pl.Buffered(weight_buffers))
        grid_spec = pltpu.PrefetchScalarGridSpec(
            num_scalar_prefetch=0,
            grid=(M // tm, N // tn, n_k),
            in_specs=[
                pl.BlockSpec((tm, tk), lambda i, j, k: (i, k)),
                pl.BlockSpec((tk, tn), lambda i, j, k: (k, j), **w_spec_kwargs),
                pl.BlockSpec((1, tn), lambda i, j, k: (0, j)),
            ],
            out_specs=pl.BlockSpec((tm, tn), lambda i, j, k: (i, j)),
            scratch_shapes=[pltpu.VMEM((tm, tn), jnp.float32)],
        )
        kernel = _linear_kernel_reduce
        dim_sem = ("parallel", "parallel", "arbitrary")

    return pl.pallas_call(
        kernel,
        out_shape=jax.ShapeDtypeStruct((M, N), out_dtype),
        grid_spec=grid_spec,
        compiler_params=pltpu.CompilerParams(
            dimension_semantics=dim_sem,
            vmem_limit_bytes=int(vmem_limit_bytes),
        ),
        cost_estimate=cost,
    )(x, w_t, b2d)


def init_linear_params(key, input_dim, output_dim, dtype=jnp.float32):
    # Mirrors torch.nn.Linear's default init: U(-1/sqrt(in), 1/sqrt(in)).
    kw, kb = jax.random.split(key)
    bound = 1.0 / (input_dim ** 0.5)
    w = jax.random.uniform(kw, (output_dim, input_dim), dtype, -bound, bound)
    b = jax.random.uniform(kb, (output_dim,), dtype, -bound, bound)
    return w, b


if __name__ == "__main__":
    input_dim, output_dim, batch = 1024, 512, 8

    key = jax.random.PRNGKey(0)
    kx, kp = jax.random.split(key)
    x = jax.random.normal(kx, (batch, input_dim), jnp.float32)
    w, b = init_linear_params(kp, input_dim, output_dim)

    # Weight kept persistently in bf16, transposed to [input_dim, output_dim]:
    # the cast happens once here (outside the hot path), halving the kernel's
    # dominant weight HBM traffic without any per-call conversion pass.
    w_t_bf16 = w.T.astype(jnp.bfloat16)

    y = linear_pallas(x, w_t_bf16, b)
    y = jax.block_until_ready(y)
    assert y.shape == (batch, output_dim)
    assert y.dtype == jnp.float32

    # Reference 1: identical bf16-weight / f32-accumulate math (tight check).
    y_ref_bf16 = (
        jnp.dot(
            x.astype(jnp.bfloat16),
            w_t_bf16,
            preferred_element_type=jnp.float32,
        )
        + b
    )
    assert jnp.allclose(y, y_ref_bf16, atol=1e-2, rtol=1e-2)

    # Reference 2: full f32 torch.nn.Linear semantics (tolerance loosened for
    # the bf16 weight/activation path; pass f32 weights for exact f32 math).
    y_ref_f32 = x @ w.T + b
    assert jnp.allclose(y, y_ref_f32, atol=5e-2, rtol=5e-2)

    print("KERNEL_OK")
</pallas_src>

<mosaic_0001>
module attributes {stable_mosaic.version = 11 : i64} {
  func.func @_linear_kernel_single(%arg0: i32, %arg1: i32, %arg2: memref<8x1024xf32, #tpu.memory_space<vmem>>, %arg3: memref<1024x256xbf16, #tpu.memory_space<vmem>>, %arg4: memref<1x256xf32, #tpu.memory_space<vmem>>, %arg5: memref<8x256xf32, #tpu.memory_space<vmem>>) attributes {dimension_semantics = [#tpu.dimension_semantics<parallel>, #tpu.dimension_semantics<parallel>], iteration_bounds = array<i64: 1, 2>, scalar_prefetch = 0 : i64, scratch_operands = 0 : i64, tpu.core_type = #tpu.core_type<tc>, window_params = [{transform_indices = @transform_0, window_bounds = array<i64: 8, 1024>}, {transform_indices = @transform_1, window_bounds = array<i64: 1024, 256>}, {transform_indices = @transform_2, window_bounds = array<i64: 1, 256>}, {transform_indices = @transform_3, window_bounds = array<i64: 8, 256>}]} {
    %c0 = arith.constant 0 : index
    %c0_0 = arith.constant 0 : index
    %0 = vector.load %arg2[%c0, %c0_0] : memref<8x1024xf32, #tpu.memory_space<vmem>>, vector<8x1024xf32>
    %1 = arith.truncf %0 : vector<8x1024xf32> to vector<8x1024xbf16>
    %c0_1 = arith.constant 0 : index
    %c0_2 = arith.constant 0 : index
    %2 = vector.load %arg3[%c0_1, %c0_2] : memref<1024x256xbf16, #tpu.memory_space<vmem>>, vector<1024x256xbf16>
    %cst = arith.constant dense<0.000000e+00> : vector<8x256xf32>
    %3 = tpu.matmul %1, %2, %cst {dimension_numbers = #tpu.dot_dimension_numbers<[1], [0], [0], [1], [0, 0, 1, 1], [], []>} : vector<8x1024xbf16>, vector<1024x256xbf16>, vector<8x256xf32> -> vector<8x256xf32>
    %c0_3 = arith.constant 0 : index
    %c0_4 = arith.constant 0 : index
    %4 = vector.load %arg4[%c0_3, %c0_4] : memref<1x256xf32, #tpu.memory_space<vmem>>, vector<1x256xf32>
    %5 = vector.broadcast %4 : vector<1x256xf32> to vector<8x256xf32>
    %6 = arith.addf %3, %5 : vector<8x256xf32>
    %c0_5 = arith.constant 0 : index
    %c0_6 = arith.constant 0 : index
    %7 = vector.load %arg5[%c0_5, %c0_6] : memref<8x256xf32, #tpu.memory_space<vmem>>, vector<8x256xf32>
    tpu.vector_store %arg5[%c0_5, %c0_6], %6 {strides = array<i32>} : memref<8x256xf32, #tpu.memory_space<vmem>>, vector<8x256xf32>,
    return
  }
  func.func @transform_0(%arg0: i32, %arg1: i32) -> (i32, i32) {
    %c0_i32 = arith.constant 0 : i32
    %c0_i32_0 = arith.constant 0 : i32
    return %arg0, %c0_i32 : i32, i32
  }
  func.func @transform_1(%arg0: i32, %arg1: i32) -> (i32, i32) {
    %c0_i32 = arith.constant 0 : i32
    %c0_i32_0 = arith.constant 0 : i32
    return %c0_i32, %arg1 : i32, i32
  }
  func.func @transform_2(%arg0: i32, %arg1: i32) -> (i32, i32) {
    %c0_i32 = arith.constant 0 : i32
    %c0_i32_0 = arith.constant 0 : i32
    return %c0_i32, %arg1 : i32, i32
  }
  func.func @transform_3(%arg0: i32, %arg1: i32) -> (i32, i32) {
    %c0_i32 = arith.constant 0 : i32
    return %arg0, %arg1 : i32, i32
  }
}

</mosaic_0001>

<bundles_post_ra>
// kernel: tpu_custom_call.1
= control target key start
LH: loop header
LB: loop body
LE: loop exit
PB: predicated region body
PF: predicated region fallthrough
CT: control target
= control target key end

     0   :  { %8 = vsyncpa [#allocation3], 0  ;;  %s2815_s0 = inlined_call_operand.hbm [shape: f32[8,1024], index: 0, kind: input, shape index: {}]   ;;  %s2816_s1 = inlined_call_operand.hbm [shape: bf16[1024,512], index: 1, kind: input, shape index: {}]   ;;  %s2817_s2 = inlined_call_operand.hbm [shape: f32[1,512], index: 2, kind: input, shape index: {}]   ;;  %s2818_s3 = inlined_call_operand.hbm [shape: f32[8,512], index: 3, kind: output, shape index: {}]  }
   0x1   :  { %9 = vsyncpa [#allocation6], 0 }
   0x2   :  { %11 = vsyncpa [#allocation6 + $0x1], 0 }
   0x3   :  { %12 = vsyncpa [#allocation4], 0 }
   0x4   :  { %14 = vsyncpa [#allocation4 + $0x1], 0  ;;  %s2346_s12 = smov 0   ;;  %s2348_s13 = smov 0  }
   0x5   :  { %s2350_s14 = smov 0   ;;  %s2352_s15 = smov 0  }
   0x6   :  { %s2354_s16 = smov 0   ;;  %s2356_s17 = smov 0  }
   0x7 LB: > { %s29_s18 = sadd.s32 1, %s2316_s16  ;;  %s65_s19 = sadd.s32 1, %s2308_s14  ;;  %s2320_s17 = sphi %s2356_s17, %s20_s17   ;;  %s2316_s16 = sphi %s2354_s16, %s2829_s16   ;;  %s2312_s15 = sphi %s2352_s15, %s2828_s15   ;;  %s2308_s14 = sphi %s2350_s14, %s2827_s14   ;;  %s2304_s13 = sphi %s2348_s13, %s2826_s13   ;;  %s2300_s12 = sphi %s2346_s12, %s2825_s12  }
   0x8   : > { %p30_p0 = scmp.ge.s32.totalorder %s29_s18, 2  ;;  %p72_p1 = scmp.ne.s32.totalorder %s2308_s14, %s2304_s13 }
   0x9   : > { %p73_p2 = scmp.eq.s32.totalorder %s2320_s17, 0  ;;  %p1405_p3 = scmp.ge.s32.totalorder %s2320_s17, 2 }
   0xa   : > { %s2831_s18 = smov (%p30_p0, %s29_s18), 0  ;;  %p2089_p5 = scmp.lt.s32.totalorder %s2320_s17, 2 }
   0xb   : > { %p2387_p4 = por %p73_p2, %p72_p1  ;;  %s62_s21 = ssub.s32 %s2316_s16, %s2831_s18 }
   0xc   : > { %s171_s22 = sand.u32 1, %s2320_s17   ;;  %p63_p6 = scmp.eq.s32.totalorder %s62_s21, 0 }
   0xd   : > { %s173_s23 = sand.u32 1, %s2308_s14   ;;  %s1933_s24 = sshll.u32 %s2316_s16, 3 }
   0xe   : > { %s2398_s25 = scalar_select %p63_p6, %s2308_s14, %s65_s19  }
   0xf   : > { %s1406_s26 = sshll.u32 %s173_s23, 10  ;;  %s180_s29 = scalar_lea.hbm %s2816_s1, %s1933_s24 }
  0x10   : > { %s181_s30 = sshll.u32 %s180_s29, 4  ;;  %s175_s4 = scalar_lea.vmem [#allocation5], %s1406_s26  ;;  %s182_s30 = int_to_ptr.hbm [resolvable:$true] %s181_s30 }
  0x11   : > { %s183_s5 = sshll.u32 %s175_s4, 4  ;;  %p2409_p7 = pnand %p2089_p5, %p2387_p4  ;;  %s184_s5 = int_to_ptr.vmem [resolvable:$true] %s183_s5 }
  0x12   : > { %s2413_s7 = scalar_lea.sflag [#allocation6], %s171_s22  ;;  %s2322_s8 = smov 256  }
  0x13   : > { %s2323_s9 = smov 128   ;;  %s2324_s10 = smov 8  }
  0x14   : > { %2080 = dma.hbm_to_vmem [thread:$0]  (!%p2409_p7), %s182_s30, 16384, %s184_s5, %s2413_s7, %s2322_s8, %s2323_s9, %s2324_s10  }
  0x15   : > { %s2419_s11 = sadd.s32 4294967295, %s2320_s17   ;;  %s1402_s19 = sadd.s32 4294967294, %s2320_s17  }
  0x16   : > { %p78_p8 = scmp.ne.s32.totalorder %s2304_s13, %s2300_s12  ;;  %p79_p9 = scmp.eq.s32.totalorder %s2419_s11, 0 }
  0x17   : > { %p130_p10 = scmp.eq.s32.totalorder %s2419_s11, 1  ;;  %p136_p11 = scmp.eq.s32.totalorder %s1402_s19, 1 }
  0x18   : > { %p2428_p12 = por %p79_p9, %p78_p8  ;;  %p1403_p13 = scmp.ge.s32.totalorder %s2320_s17, 1 }
  0x19   : > { %p2436_p0 = por %p130_p10, %p72_p1  ;;  %p2440_p2 = por %p136_p11, %p78_p8 }
  0x1a   : > { %p143_p4 = scmp.lt.s32.totalorder %s2320_s17, 3  ;;  %s158_s27 = sshll.u32 %s2815_s0, 4  ;;  %s159_s27 = int_to_ptr.hbm [resolvable:$true] %s158_s27 }
  0x1b   : > { %s2325_s29 = smov [#allocation2]   ;;  %s1409_s4 = sshll.u32 %s173_s23, 1 }
  0x1c   : > { %p2448_p5 = pnand %p1403_p13, %p143_p4  ;;  %s160_s30 = sshll.u32 %s2325_s29, 4  ;;  %s161_s30 = int_to_ptr.vmem [resolvable:$true] %s160_s30 }
  0x1d   : > { %s1410_s5 = sshll.u32 %s2316_s16, 1  ;;  %s197_s24 = scalar_lea.vmem [#allocation7], %s1409_s4 }
  0x1e   : > { %p2073_p1 = pneg %p2448_p5  ;;  %s201_s10 = scalar_lea.hbm %s2817_s2, %s1410_s5 }
  0x1f   : > { %s203_s19 = sshll.u32 %s201_s10, 4  ;;  %s205_s26 = sshll.u32 %s197_s24, 4  ;;  %s204_s19 = int_to_ptr.hbm [resolvable:$true] %s203_s19  ;;  %s206_s26 = int_to_ptr.vmem [resolvable:$true] %s205_s26 }
  0x20   : > { %p2074_p6 = pnand %p2073_p1, %p79_p9  ;;  %214 = sbr.rel (%p2448_p5) target bundleno = 315 (0x13b), region = 32 }
  0x21   : > { %2083 = dma.hbm_to_vmem [thread:$0]  (!%p2409_p7), %s204_s19, 32, %s206_s26, %s2413_s7  }
  0x22   : > { %2076 = dma.hbm_to_vmem [thread:$0]  (!%p2074_p6), %s159_s27, 1024, %s161_s30, [#allocation3]  }
  0x25   : > { %2287 = dma.done.wait (%p79_p9), [#allocation3], 1024  }
  0x26   : > { %2289 = vsyncadd (%p79_p9), [#allocation3], 4294966272  ;;  %s221_s23 = sand.u32 1, %s2419_s11   ;;  %s2473_s29 = sand.u32 1, %s2304_s13  }
  0x27   : > { %s1413_s27 = sshll.u32 %s2473_s29, 10  ;;  %s222_s30 = scalar_lea.sflag [#allocation6], %s221_s23 }
  0x28   : > { %s2476_s6 = scalar_lea.vmem [#allocation5], %s1413_s27 }
  0x29   : > { %2291 = dma.done.wait (%p2428_p12), %s222_s30, 16416  }
  0x2a   : > { %2293 = vsyncadd (%p2428_p12), %s222_s30, 4294950880  ;;  %v1474_v0 = vld [vmem:[%s2476_s6 + $0x70] sm:$0xf]  ;;  %v1949_v1 = vld [vmem:[%s2476_s6 + $0x74] sm:$0xf0]  ;;  %s1414_s7 = sshll.u32 %s2473_s29, 1 }
  0x2b   : > { %v1538_v2 = vld [vmem:[%s2476_s6 + $0xf0] sm:$0xf]  ;;  %v1475_v3 = vor.u32 %v1949_v1, %v1474_v0  ;;  %v1965_v4 = vld [vmem:[%s2476_s6 + $0xf4] sm:$0xf0]  ;;  %v1466_v11 = vld [vmem:[%s2476_s6 + $0x60] sm:$0xf] }
  0x2c   : > { %v1602_v5 = vld [vmem:[%s2476_s6 + $0x170] sm:$0xf]  ;;  %v1981_v6 = vld [vmem:[%s2476_s6 + $0x174] sm:$0xf0]  ;;  %v1539_v7 = vor.u32 %v1965_v4, %v1538_v2  ;;  %v1947_v13 = vld [vmem:[%s2476_s6 + $0x64] sm:$0xf0] }
  0x2d   : > { %v1603_v8 = vor.u32 %v1981_v6, %v1602_v5  ;;  %v1666_v9 = vld [vmem:[%s2476_s6 + $0x1f0] sm:$0xf]  ;;  %v1997_v10 = vld [vmem:[%s2476_s6 + $0x1f4] sm:$0xf0]  ;;  %1057 = vmatpush.bf16.msra.mxu0 %v1475_v3  ;;  %v1530_v14 = vld [vmem:[%s2476_s6 + $0xe0] sm:$0xf]  ;;  %v1467_v16 = vor.u32 %v1947_v13, %v1466_v11 }
  0x2e   : > { %v1667_v12 = vor.u32 %v1997_v10, %v1666_v9  ;;  %v1963_v15 = vld [vmem:[%s2476_s6 + $0xe4] sm:$0xf0]  ;;  %1070 = vmatpush.bf16.msra.mxu1 %v1539_v7  ;;  %v1594_v18 = vld [vmem:[%s2476_s6 + $0x160] sm:$0xf]  ;;  %v1458_v23 = vld [vmem:[%s2476_s6 + $0x50] sm:$0xf] }
  0x2f   : > { %1083 = vmatpush.bf16.msra.mxu2 %v1603_v8  ;;  %v1531_v17 = vor.u32 %v1963_v15, %v1530_v14  ;;  %v1979_v19 = vld [vmem:[%s2476_s6 + $0x164] sm:$0xf0]  ;;  %v1658_v20 = vld [vmem:[%s2476_s6 + $0x1e0] sm:$0xf]  ;;  %v1945_v24 = vld [vmem:[%s2476_s6 + $0x54] sm:$0xf0] }
  0x30   : > { %1096 = vmatpush.bf16.msra.mxu3 %v1667_v12  ;;  %v1595_v21 = vor.u32 %v1979_v19, %v1594_v18  ;;  %v1995_v22 = vld [vmem:[%s2476_s6 + $0x1e4] sm:$0xf0]  ;;  %v1522_v26 = vld [vmem:[%s2476_s6 + $0xd0] sm:$0xf]  ;;  %v1961_v27 = vld [vmem:[%s2476_s6 + $0xd4] sm:$0xf0]  ;;  %v1459_v29 = vor.u32 %v1945_v24, %v1458_v23 }
  0x31   : > { %v1659_v25 = vor.u32 %v1995_v22, %v1658_v20  ;;  %v1586_v28 = vld [vmem:[%s2476_s6 + $0x150] sm:$0xf]  ;;  %1058 = vmatpush.bf16.msra.mxu0 %v1467_v16  ;;  %v1977_v30 = vld [vmem:[%s2476_s6 + $0x154] sm:$0xf0]  ;;  %v1523_v33 = vor.u32 %v1961_v27, %v1522_v26  ;;  %v1450_v35 = vld [vmem:[%s2476_s6 + $0x40] sm:$0xf] }
  0x32   : > { %v1650_v31 = vld [vmem:[%s2476_s6 + $0x1d0] sm:$0xf]  ;;  %v1993_v32 = vld [vmem:[%s2476_s6 + $0x1d4] sm:$0xf0]  ;;  %1071 = vmatpush.bf16.msra.mxu1 %v1531_v17  ;;  %v1587_v34 = vor.u32 %v1977_v30, %v1586_v28  ;;  %v1943_v36 = vld [vmem:[%s2476_s6 + $0x44] sm:$0xf0] }
  0x33   : > { %1084 = vmatpush.bf16.msra.mxu2 %v1595_v21  ;;  %v1514_v37 = vld [vmem:[%s2476_s6 + $0xc0] sm:$0xf]  ;;  %v1651_v38 = vor.u32 %v1993_v32, %v1650_v31  ;;  %v1959_v39 = vld [vmem:[%s2476_s6 + $0xc4] sm:$0xf0]  ;;  %v1451_v44 = vor.u32 %v1943_v36, %v1450_v35  ;;  %v1442_v47 = vld [vmem:[%s2476_s6 + $0x30] sm:$0xf] }
  0x34   : > { %1097 = vmatpush.bf16.msra.mxu3 %v1659_v25  ;;  %v1578_v40 = vld [vmem:[%s2476_s6 + $0x140] sm:$0xf]  ;;  %v1975_v41 = vld [vmem:[%s2476_s6 + $0x144] sm:$0xf0]  ;;  %v1515_v45 = vor.u32 %v1959_v39, %v1514_v37  ;;  %v1941_v48 = vld [vmem:[%s2476_s6 + $0x34] sm:$0xf0] }
  0x35   : > { %v1642_v42 = vld [vmem:[%s2476_s6 + $0x1c0] sm:$0xf]  ;;  %v1991_v43 = vld [vmem:[%s2476_s6 + $0x1c4] sm:$0xf0]  ;;  %1059 = vmatpush.bf16.msra.mxu0 %v1459_v29  ;;  %v1579_v46 = vor.u32 %v1975_v41, %v1578_v40  ;;  %v1506_v49 = vld [vmem:[%s2476_s6 + $0xb0] sm:$0xf]  ;;  %v1443_v56 = vor.u32 %v1941_v48, %v1442_v47 }
  0x36   : > { %1072 = vmatpush.bf16.msra.mxu1 %v1523_v33  ;;  %v1643_v50 = vor.u32 %v1991_v43, %v1642_v42  ;;  %v1957_v51 = vld [vmem:[%s2476_s6 + $0xb4] sm:$0xf0]  ;;  %v1570_v52 = vld [vmem:[%s2476_s6 + $0x130] sm:$0xf]  ;;  %v1434_v59 = vld [vmem:[%s2476_s6 + $0x20] sm:$0xf] }
  0x37   : > { %1085 = vmatpush.bf16.msra.mxu2 %v1587_v34  ;;  %v1973_v53 = vld [vmem:[%s2476_s6 + $0x134] sm:$0xf0]  ;;  %v1634_v54 = vld [vmem:[%s2476_s6 + $0x1b0] sm:$0xf]  ;;  %v1507_v57 = vor.u32 %v1957_v51, %v1506_v49  ;;  %v1939_v60 = vld [vmem:[%s2476_s6 + $0x24] sm:$0xf0] }
  0x38   : > { %1098 = vmatpush.bf16.msra.mxu3 %v1651_v38  ;;  %v1989_v55 = vld [vmem:[%s2476_s6 + $0x1b4] sm:$0xf0]  ;;  %v1571_v58 = vor.u32 %v1973_v53, %v1570_v52  ;;  %v1498_v61 = vld [vmem:[%s2476_s6 + $0xa0] sm:$0xf]  ;;  %v1955_v63 = vld [vmem:[%s2476_s6 + $0xa4] sm:$0xf0]  ;;  %v1435_v4 = vor.u32 %v1939_v60, %v1434_v59 }
  0x39   : > { %1060 = vmatpush.bf16.msra.mxu0 %v1451_v44  ;;  %v1635_v62 = vor.u32 %v1989_v55, %v1634_v54  ;;  %v1562_v0 = vld [vmem:[%s2476_s6 + $0x120] sm:$0xf]  ;;  %v1971_v1 = vld [vmem:[%s2476_s6 + $0x124] sm:$0xf0]  ;;  %v1499_v5 = vor.u32 %v1955_v63, %v1498_v61  ;;  %v1426_v7 = vld [vmem:[%s2476_s6 + $0x10] sm:$0xf] }
  0x3a   : > { %1073 = vmatpush.bf16.msra.mxu1 %v1515_v45  ;;  %v1626_v2 = vld [vmem:[%s2476_s6 + $0x1a0] sm:$0xf]  ;;  %v1987_v3 = vld [vmem:[%s2476_s6 + $0x1a4] sm:$0xf0]  ;;  %v1563_v6 = vor.u32 %v1971_v1, %v1562_v0  ;;  %v1937_v8 = vld [vmem:[%s2476_s6 + $0x14] sm:$0xf0] }
  0x3b   : > { %1086 = vmatpush.bf16.msra.mxu2 %v1579_v46  ;;  %v1490_v9 = vld [vmem:[%s2476_s6 + $0x90] sm:$0xf]  ;;  %v1627_v10 = vor.u32 %v1987_v3, %v1626_v2  ;;  %v1953_v11 = vld [vmem:[%s2476_s6 + $0x94] sm:$0xf0]  ;;  %v1427_v16 = vor.u32 %v1937_v8, %v1426_v7  ;;  %v1418_v17 = vld [vmem:[%s2476_s6] sm:$0xf] }
  0x3c   : > { %1099 = vmatpush.bf16.msra.mxu3 %v1643_v50  ;;  %v1554_v12 = vld [vmem:[%s2476_s6 + $0x110] sm:$0xf]  ;;  %v1969_v13 = vld [vmem:[%s2476_s6 + $0x114] sm:$0xf0]  ;;  %v1935_v18 = vld [vmem:[%s2476_s6 + $0x4] sm:$0xf0]  ;;  %v1491_v19 = vor.u32 %v1953_v11, %v1490_v9 }
  0x3d   : > { %1061 = vmatpush.bf16.msra.mxu0 %v1443_v56  ;;  %v1618_v14 = vld [vmem:[%s2476_s6 + $0x190] sm:$0xf]  ;;  %v1985_v15 = vld [vmem:[%s2476_s6 + $0x194] sm:$0xf0]  ;;  %v1555_v20 = vor.u32 %v1969_v13, %v1554_v12  ;;  %v1482_v21 = vld [vmem:[%s2476_s6 + $0x80] sm:$0xf]  ;;  %v1419_v31 = vor.u32 %v1935_v18, %v1418_v17 }
  0x3e   : > { %1074 = vmatpush.bf16.msra.mxu1 %v1507_v57  ;;  %v1951_v22 = vld [vmem:[%s2476_s6 + $0x84] sm:$0xf0]  ;;  %v1546_v23 = vld [vmem:[%s2476_s6 + $0x100] sm:$0xf]  ;;  %v1619_v24 = vor.u32 %v1985_v15, %v1618_v14  ;;  %v1730_v28 = vld [vmem:[%s2476_s6 + $0x270] sm:$0xf] }
  0x3f   : > { %1087 = vmatpush.bf16.msra.mxu2 %v1571_v58  ;;  %v1967_v25 = vld [vmem:[%s2476_s6 + $0x104] sm:$0xf0]  ;;  %v1610_v26 = vld [vmem:[%s2476_s6 + $0x180] sm:$0xf]  ;;  %v2013_v29 = vld [vmem:[%s2476_s6 + $0x274] sm:$0xf0]  ;;  %v1483_v35 = vor.u32 %v1951_v22, %v1482_v21 }
  0x40   : > { %1100 = vmatpush.bf16.msra.mxu3 %v1635_v62  ;;  %v1983_v27 = vld [vmem:[%s2476_s6 + $0x184] sm:$0xf0]  ;;  %v1794_v30 = vld [vmem:[%s2476_s6 + $0x2f0] sm:$0xf]  ;;  %v2029_v32 = vld [vmem:[%s2476_s6 + $0x2f4] sm:$0xf0]  ;;  %v1547_v36 = vor.u32 %v1967_v25, %v1546_v23  ;;  %v1731_v40 = vor.u32 %v2013_v29, %v1730_v28 }
  0x41   : > { %1062 = vmatpush.bf16.msra.mxu0 %v1435_v4  ;;  %v1858_v33 = vld [vmem:[%s2476_s6 + $0x370] sm:$0xf]  ;;  %v2045_v34 = vld [vmem:[%s2476_s6 + $0x374] sm:$0xf0]  ;;  %v1611_v39 = vor.u32 %v1983_v27, %v1610_v26  ;;  %v1795_v41 = vor.u32 %v2029_v32, %v1794_v30  ;;  %v1722_v43 = vld [vmem:[%s2476_s6 + $0x260] sm:$0xf] }
  0x42   : > { %1075 = vmatpush.bf16.msra.mxu1 %v1499_v5  ;;  %v1922_v37 = vld [vmem:[%s2476_s6 + $0x3f0] sm:$0xf]  ;;  %v2061_v38 = vld [vmem:[%s2476_s6 + $0x3f4] sm:$0xf0]  ;;  %v1859_v42 = vor.u32 %v2045_v34, %v1858_v33  ;;  %v2011_v44 = vld [vmem:[%s2476_s6 + $0x264] sm:$0xf0] }
  0x43   : > { %1088 = vmatpush.bf16.msra.mxu2 %v1563_v6  ;;  %v1786_v45 = vld [vmem:[%s2476_s6 + $0x2e0] sm:$0xf]  ;;  %v1923_v46 = vor.u32 %v2061_v38, %v1922_v37  ;;  %v2027_v47 = vld [vmem:[%s2476_s6 + $0x2e4] sm:$0xf0]  ;;  %v1723_v52 = vor.u32 %v2011_v44, %v1722_v43  ;;  %v1714_v53 = vld [vmem:[%s2476_s6 + $0x250] sm:$0xf] }
  0x44   : > { %1101 = vmatpush.bf16.msra.mxu3 %v1627_v10  ;;  %v1850_v48 = vld [vmem:[%s2476_s6 + $0x360] sm:$0xf]  ;;  %v2043_v49 = vld [vmem:[%s2476_s6 + $0x364] sm:$0xf0]  ;;  %v1787_v54 = vor.u32 %v2027_v47, %v1786_v45  ;;  %v2009_v56 = vld [vmem:[%s2476_s6 + $0x254] sm:$0xf0] }
  0x45   : > { %1063 = vmatpush.bf16.msra.mxu0 %v1427_v16  ;;  %v1914_v50 = vld [vmem:[%s2476_s6 + $0x3e0] sm:$0xf]  ;;  %v2059_v51 = vld [vmem:[%s2476_s6 + $0x3e4] sm:$0xf0]  ;;  %v1851_v55 = vor.u32 %v2043_v49, %v1850_v48  ;;  %v1778_v57 = vld [vmem:[%s2476_s6 + $0x2d0] sm:$0xf]  ;;  %v1715_v2 = vor.u32 %v2009_v56, %v1714_v53 }
  0x46   : > { %1076 = vmatpush.bf16.msra.mxu1 %v1491_v19  ;;  %v269_v58 = vld [vmem:[#allocation2 + $0x10] sm:$0xff]  ;;  %v1915_v59 = vor.u32 %v2059_v51, %v1914_v50  ;;  %v2025_v60 = vld [vmem:[%s2476_s6 + $0x2d4] sm:$0xf0]  ;;  %v1706_v3 = vld [vmem:[%s2476_s6 + $0x240] sm:$0xf]  ;;  %s235_s11 = scalar_lea.vmem [#allocation7], %s1414_s7 }
  0x47   : > { %1089 = vmatpush.bf16.msra.mxu2 %v1555_v20  ;;  %v1842_v61 = vld [vmem:[%s2476_s6 + $0x350] sm:$0xf]  ;;  %v2041_v62 = vld [vmem:[%s2476_s6 + $0x354] sm:$0xf0]  ;;  %v2568_v63 = vpack.c.bf16 %v269_v58, %v269_v58  ;;  %v2007_v4 = vld [vmem:[%s2476_s6 + $0x244] sm:$0xf0]  ;;  %v1779_v6 = vor.u32 %v2025_v60, %v1778_v57 }
  0x48   : > { %1102 = vmatpush.bf16.msra.mxu3 %v1619_v24  ;;  %v1906_v0 = vld [vmem:[%s2476_s6 + $0x3d0] sm:$0xf]  ;;  %v2057_v1 = vld [vmem:[%s2476_s6 + $0x3d4] sm:$0xf0]  ;;  %v267_v5 = vld [vmem:[#allocation2] sm:$0xff]  ;;  %v1843_v7 = vor.u32 %v2041_v62, %v1842_v61  ;;  %v1707_v20 = vor.u32 %v2007_v4, %v1706_v3  ;;  %s1415_s20 = sshll.u32 %s2473_s29, 4 }
  0x49   : > { %1064 = vmatpush.bf16.msra.mxu0 %v1419_v31  ;;  %v1770_v8 = vld [vmem:[%s2476_s6 + $0x2c0] sm:$0xf]  ;;  %v2576_v9 = vpack.c.bf16 %v267_v5, %v267_v5  ;;  %v270_v10 = vld [vmem:[#allocation2 + $0x18] sm:$0xff]  ;;  %v268_v11 = vld [vmem:[#allocation2 + $0x8] sm:$0xff]  ;;  %v1907_v12 = vor.u32 %v2057_v1, %v1906_v0  ;;  %s2772_s28 = scalar_lea.vmem [#allocation8], %s1415_s20  ;;  %s2062_s4 = sshll.u32 %s2312_s15, 4 }
  0x4a   : > { %1077 = vmatpush.bf16.msra.mxu1 %v1483_v35  ;;  %v2023_v13 = vld [vmem:[%s2476_s6 + $0x2c4] sm:$0xf0]  ;;  %v1834_v14 = vld [vmem:[%s2476_s6 + $0x340] sm:$0xf]  ;;  %v2581_v16 = vpack.c.bf16 %v270_v10, %v270_v10  ;;  %v2583_v17 = vpack.c.bf16 %v268_v11, %v268_v11  ;;  %v1698_v23 = vld [vmem:[%s2476_s6 + $0x230] sm:$0xf]  ;;  %s1281_s9 = scalar_lea.hbm %s2818_s3, %s2062_s4 }
  0x4b   : > { %1090 = vmatpush.bf16.msra.mxu2 %v1547_v36  ;;  %v2039_v15 = vld [vmem:[%s2476_s6 + $0x344] sm:$0xf0]  ;;  %v1898_v18 = vld [vmem:[%s2476_s6 + $0x3c0] sm:$0xf]  ;;  %v1771_v21 = vor.u32 %v2023_v13, %v1770_v8  ;;  %v2005_v24 = vld [vmem:[%s2476_s6 + $0x234] sm:$0xf0] }
  0x4c   : > { %1103 = vmatpush.bf16.msra.mxu3 %v1611_v39  ;;  %v2055_v19 = vld [vmem:[%s2476_s6 + $0x3c4] sm:$0xf0]  ;;  %1065 = vmatmul.bf16.vlgmr.msra.gmra.mxu0 %v2576_v9  ;;  %v1835_v22 = vor.u32 %v2039_v15, %v1834_v14  ;;  %v1762_v25 = vld [vmem:[%s2476_s6 + $0x2b0] sm:$0xf]  ;;  %v2021_v27 = vld [vmem:[%s2476_s6 + $0x2b4] sm:$0xf0]  ;;  %v1699_v32 = vor.u32 %v2005_v24, %v1698_v23 }
  0x4d   : > { %1109 = vmatpush.bf16.msrb.mxu0 %v1731_v40  ;;  %v1899_v26 = vor.u32 %v2055_v19, %v1898_v18  ;;  %v1826_v28 = vld [vmem:[%s2476_s6 + $0x330] sm:$0xf]  ;;  %v2037_v29 = vld [vmem:[%s2476_s6 + $0x334] sm:$0xf0]  ;;  %1078 = vmatmul.bf16.vlgmr.msra.gmra.mxu1 %v2583_v17  ;;  %v1763_v33 = vor.u32 %v2021_v27, %v1762_v25  ;;  %v1690_v35 = vld [vmem:[%s2476_s6 + $0x220] sm:$0xf] }
  0x4e   : > { %1122 = vmatpush.bf16.msrb.mxu1 %v1795_v41  ;;  %1091 = vmatmul.bf16.vlgmr.msra.gmra.mxu2 %v2568_v63  ;;  %v1890_v30 = vld [vmem:[%s2476_s6 + $0x3b0] sm:$0xf]  ;;  %v2053_v31 = vld [vmem:[%s2476_s6 + $0x3b4] sm:$0xf0]  ;;  %v1827_v34 = vor.u32 %v2037_v29, %v1826_v28  ;;  %v2003_v36 = vld [vmem:[%s2476_s6 + $0x224] sm:$0xf0] }
  0x4f   : > { %1135 = vmatpush.bf16.msrb.mxu2 %v1859_v42  ;;  %1104 = vmatmul.bf16.vlgmr.msra.gmra.mxu3 %v2581_v16  ;;  %v1754_v37 = vld [vmem:[%s2476_s6 + $0x2a0] sm:$0xf]  ;;  %v1891_v38 = vor.u32 %v2053_v31, %v1890_v30  ;;  %v2019_v39 = vld [vmem:[%s2476_s6 + $0x2a4] sm:$0xf0]  ;;  %v1691_v44 = vor.u32 %v2003_v36, %v1690_v35  ;;  %v1682_v47 = vld [vmem:[%s2476_s6 + $0x210] sm:$0xf] }
  0x50   : > { %1148 = vmatpush.bf16.msrb.mxu3 %v1923_v46  ;;  %v1818_v40 = vld [vmem:[%s2476_s6 + $0x320] sm:$0xf]  ;;  %v2035_v41 = vld [vmem:[%s2476_s6 + $0x324] sm:$0xf0]  ;;  %v1755_v45 = vor.u32 %v2019_v39, %v1754_v37  ;;  %v2001_v48 = vld [vmem:[%s2476_s6 + $0x214] sm:$0xf0] }
  0x51   : > { %1110 = vmatpush.bf16.msrb.mxu0 %v1723_v52  ;;  %v1882_v42 = vld [vmem:[%s2476_s6 + $0x3a0] sm:$0xf]  ;;  %v2051_v43 = vld [vmem:[%s2476_s6 + $0x3a4] sm:$0xf0]  ;;  %v1819_v46 = vor.u32 %v2035_v41, %v1818_v40  ;;  %v1746_v49 = vld [vmem:[%s2476_s6 + $0x290] sm:$0xf]  ;;  %v1683_v56 = vor.u32 %v2001_v48, %v1682_v47 }
  0x52   : > { %1123 = vmatpush.bf16.msrb.mxu1 %v1787_v54  ;;  %v1883_v50 = vor.u32 %v2051_v43, %v1882_v42  ;;  %v2017_v51 = vld [vmem:[%s2476_s6 + $0x294] sm:$0xf0]  ;;  %v1810_v52 = vld [vmem:[%s2476_s6 + $0x310] sm:$0xf]  ;;  %v1674_v57 = vld [vmem:[%s2476_s6 + $0x200] sm:$0xf] }
  0x53   : > { %1136 = vmatpush.bf16.msrb.mxu2 %v1851_v55  ;;  %v2033_v53 = vld [vmem:[%s2476_s6 + $0x314] sm:$0xf0]  ;;  %v1874_v54 = vld [vmem:[%s2476_s6 + $0x390] sm:$0xf]  ;;  %v1999_v58 = vld [vmem:[%s2476_s6 + $0x204] sm:$0xf0] }
  0x54   : > { %1149 = vmatpush.bf16.msrb.mxu3 %v1915_v59  ;;  %v2049_v55 = vld [vmem:[%s2476_s6 + $0x394] sm:$0xf0]  ;;  %v1747_v59 = vor.u32 %v2017_v51, %v1746_v49  ;;  %v1811_v60 = vor.u32 %v2033_v53, %v1810_v52  ;;  %v1738_v61 = vld [vmem:[%s2476_s6 + $0x280] sm:$0xf]  ;;  %v2015_v62 = vld [vmem:[%s2476_s6 + $0x284] sm:$0xf0]  ;;  %v1675_v8 = vor.u32 %v1999_v58, %v1674_v57 }
  0x55   : > { %1111 = vmatpush.bf16.msrb.mxu0 %v1715_v2  ;;  %v1802_v0 = vld [vmem:[%s2476_s6 + $0x300] sm:$0xf]  ;;  %v1875_v1 = vor.u32 %v2049_v55, %v1874_v54  ;;  %v2031_v2 = vld [vmem:[%s2476_s6 + $0x304] sm:$0xf0]  ;;  %v1948_v5 = vld [vmem:[%s2476_s6 + $0x74] sm:$0xf]  ;;  %v1739_v13 = vor.u32 %v2015_v62, %v1738_v61 }
  0x56   : > { %1124 = vmatpush.bf16.msrb.mxu1 %v1779_v6  ;;  %v1866_v3 = vld [vmem:[%s2476_s6 + $0x380] sm:$0xf]  ;;  %v2047_v4 = vld [vmem:[%s2476_s6 + $0x384] sm:$0xf0]  ;;  %v1476_v6 = vld [vmem:[%s2476_s6 + $0x78] sm:$0xf0]  ;;  %v1803_v14 = vor.u32 %v2031_v2, %v1802_v0 }
  0x57   : > { %1137 = vmatpush.bf16.msrb.mxu2 %v1843_v7  ;;  %v1964_v7 = vld [vmem:[%s2476_s6 + $0xf4] sm:$0xf]  ;;  %v1540_v10 = vld [vmem:[%s2476_s6 + $0xf8] sm:$0xf0]  ;;  %v271_v23 = vld [vmem:[#allocation2 + $0x20] sm:$0xff]  ;;  %s1283_s10 = sshll.u32 %s2772_s28, 4  ;;  %s1284_s10 = int_to_ptr.vmem [resolvable:$true] %s1283_s10 }
  0x58   : > { %1150 = vmatpush.bf16.msrb.mxu3 %v1907_v12  ;;  %v1980_v11 = vld [vmem:[%s2476_s6 + $0x174] sm:$0xf]  ;;  %v1604_v12 = vld [vmem:[%s2476_s6 + $0x178] sm:$0xf0]  ;;  %v1543_v25 = vor.u32 %v1964_v7, %v1540_v10  ;;  %v1468_v27 = vld [vmem:[%s2476_s6 + $0x68] sm:$0xf0]  ;;  %v2640_v37 = vpack.c.bf16 %v271_v23, %v271_v23 }
  0x59   : > { %1112 = vmatpush.bf16.msrb.mxu0 %v1707_v20  ;;  %v1996_v15 = vld [vmem:[%s2476_s6 + $0x1f4] sm:$0xf]  ;;  %v1668_v18 = vld [vmem:[%s2476_s6 + $0x1f8] sm:$0xf0]  ;;  %v1867_v20 = vor.u32 %v2047_v4, %v1866_v3  ;;  %v1962_v28 = vld [vmem:[%s2476_s6 + $0xe4] sm:$0xf] }
  0x5a   : > { %1125 = vmatpush.bf16.msrb.mxu1 %v1771_v21  ;;  %v273_v19 = vld [vmem:[#allocation2 + $0x30] sm:$0xff]  ;;  %v1479_v21 = vor.u32 %v1948_v5, %v1476_v6  ;;  %v274_v24 = vld [vmem:[#allocation2 + $0x38] sm:$0xff]  ;;  %v272_v29 = vld [vmem:[#allocation2 + $0x28] sm:$0xff]  ;;  %v1671_v30 = vor.u32 %v1996_v15, %v1668_v18  ;;  %s1285_s19 = sshll.u32 %s1281_s9, 4  ;;  %s1268_s24 = scalar_lea.sflag [#allocation4], %s2473_s29  ;;  %s1286_s19 = int_to_ptr.hbm [resolvable:$true] %s1285_s19 }
  0x5b   : > { %1138 = vmatpush.bf16.msrb.mxu2 %v1835_v22  ;;  %v1946_v22 = vld [vmem:[%s2476_s6 + $0x64] sm:$0xf]  ;;  %v1532_v31 = vld [vmem:[%s2476_s6 + $0xe8] sm:$0xf0]  ;;  %v2644_v40 = vpack.c.bf16 %v272_v29, %v272_v29  ;;  %v1944_v43 = vld [vmem:[%s2476_s6 + $0x54] sm:$0xf] }
  0x5c   : > { %1151 = vmatpush.bf16.msrb.mxu3 %v1899_v26  ;;  %v1607_v26 = vor.u32 %v1980_v11, %v1604_v12  ;;  %v1994_v35 = vld [vmem:[%s2476_s6 + $0x1e4] sm:$0xf]  ;;  %v1660_v36 = vld [vmem:[%s2476_s6 + $0x1e8] sm:$0xf0]  ;;  %v1471_v39 = vor.u32 %v1946_v22, %v1468_v27  ;;  %v1535_v41 = vor.u32 %v1962_v28, %v1532_v31  ;;  %v1524_v47 = vld [vmem:[%s2476_s6 + $0xd8] sm:$0xf0] }
  0x5d   : > { %1113 = vmatpush.bf16.msrb.mxu0 %v1699_v32  ;;  %v1978_v32 = vld [vmem:[%s2476_s6 + $0x164] sm:$0xf]  ;;  %v1976_v48 = vld [vmem:[%s2476_s6 + $0x154] sm:$0xf]  ;;  %v1588_v49 = vld [vmem:[%s2476_s6 + $0x158] sm:$0xf0] }
  0x5e   : > { %1126 = vmatpush.bf16.msrb.mxu1 %v1763_v33  ;;  %v1596_v33 = vld [vmem:[%s2476_s6 + $0x168] sm:$0xf0]  ;;  %v1652_v51 = vld [vmem:[%s2476_s6 + $0x1d8] sm:$0xf0]  ;;  %v1591_v54 = vor.u32 %v1976_v48, %v1588_v49  ;;  %v1942_v55 = vld [vmem:[%s2476_s6 + $0x44] sm:$0xf] }
  0x5f   : > { %1139 = vmatpush.bf16.msrb.mxu2 %v1827_v34  ;;  %v2636_v34 = vpack.c.bf16 %v273_v19, %v273_v19  ;;  %v1599_v42 = vor.u32 %v1978_v32, %v1596_v33  ;;  %v1958_v57 = vld [vmem:[%s2476_s6 + $0xc4] sm:$0xf]  ;;  %v1580_v61 = vld [vmem:[%s2476_s6 + $0x148] sm:$0xf0]  ;;  %v1940_v4 = vld [vmem:[%s2476_s6 + $0x34] sm:$0xf] }
  0x60   : > { %1152 = vmatpush.bf16.msrb.mxu3 %v1891_v38  ;;  %v2642_v38 = vpack.c.bf16 %v274_v24, %v274_v24  ;;  %v1990_v62 = vld [vmem:[%s2476_s6 + $0x1c4] sm:$0xf]  ;;  %v1644_v0 = vld [vmem:[%s2476_s6 + $0x1c8] sm:$0xf0]  ;;  %v1444_v5 = vld [vmem:[%s2476_s6 + $0x38] sm:$0xf0] }
  0x61   : > { %1114 = vmatpush.bf16.msrb.mxu0 %v1691_v44  ;;  %v1460_v44 = vld [vmem:[%s2476_s6 + $0x58] sm:$0xf0]  ;;  %v1956_v6 = vld [vmem:[%s2476_s6 + $0xb4] sm:$0xf]  ;;  %v1647_v7 = vor.u32 %v1990_v62, %v1644_v0  ;;  %v1938_v19 = vld [vmem:[%s2476_s6 + $0x24] sm:$0xf] }
  0x62   : > { %1127 = vmatpush.bf16.msrb.mxu1 %v1755_v45  ;;  %v1960_v45 = vld [vmem:[%s2476_s6 + $0xd4] sm:$0xf]  ;;  %v1463_v52 = vor.u32 %v1944_v43, %v1460_v44  ;;  %v1572_v11 = vld [vmem:[%s2476_s6 + $0x138] sm:$0xf0]  ;;  %v1500_v23 = vld [vmem:[%s2476_s6 + $0xa8] sm:$0xf0] }
  0x63   : > { %1140 = vmatpush.bf16.msrb.mxu2 %v1819_v46  ;;  %v1663_v46 = vor.u32 %v1994_v35, %v1660_v36  ;;  %v1527_v53 = vor.u32 %v1960_v45, %v1524_v47  ;;  %v1972_v10 = vld [vmem:[%s2476_s6 + $0x134] sm:$0xf]  ;;  %v1970_v24 = vld [vmem:[%s2476_s6 + $0x124] sm:$0xf]  ;;  %v1628_v27 = vld [vmem:[%s2476_s6 + $0x1a8] sm:$0xf0] }
  0x64   : > { %1153 = vmatpush.bf16.msrb.mxu3 %v1883_v50  ;;  %v1992_v50 = vld [vmem:[%s2476_s6 + $0x1d4] sm:$0xf]  ;;  %v1575_v18 = vor.u32 %v1972_v10, %v1572_v11  ;;  %v1428_v32 = vld [vmem:[%s2476_s6 + $0x18] sm:$0xf0]  ;;  %v1934_v45 = vld [vmem:[%s2476_s6 + $0x4] sm:$0xf] }
  0x65   : > { %1115 = vmatpush.bf16.msrb.mxu0 %v1683_v56  ;;  %v1452_v56 = vld [vmem:[%s2476_s6 + $0x48] sm:$0xf0]  ;;  %v1655_v58 = vor.u32 %v1992_v50, %v1652_v51  ;;  %v1988_v12 = vld [vmem:[%s2476_s6 + $0x1b4] sm:$0xf]  ;;  %v1492_v36 = vld [vmem:[%s2476_s6 + $0x98] sm:$0xf0] }
  0x66   : > { %1128 = vmatpush.bf16.msrb.mxu1 %v1747_v59  ;;  %v1516_v59 = vld [vmem:[%s2476_s6 + $0xc8] sm:$0xf0]  ;;  %v1936_v31 = vld [vmem:[%s2476_s6 + $0x14] sm:$0xf]  ;;  %v1620_v43 = vld [vmem:[%s2476_s6 + $0x198] sm:$0xf0] }
  0x67   : > { %1141 = vmatpush.bf16.msrb.mxu2 %v1811_v60  ;;  %v1974_v60 = vld [vmem:[%s2476_s6 + $0x144] sm:$0xf]  ;;  %v1519_v2 = vor.u32 %v1958_v57, %v1516_v59  ;;  %v1952_v33 = vld [vmem:[%s2476_s6 + $0x94] sm:$0xf]  ;;  %v1431_v44 = vor.u32 %v1936_v31, %v1428_v32  ;;  %v1484_v50 = vld [vmem:[%s2476_s6 + $0x88] sm:$0xf0] }
  0x68   : > { %1154 = vmatpush.bf16.msrb.mxu3 %v1875_v1  ;;  %v1455_v1 = vor.u32 %v1942_v55, %v1452_v56  ;;  %v1583_v3 = vor.u32 %v1974_v60, %v1580_v61  ;;  %v1495_v47 = vor.u32 %v1952_v33, %v1492_v36  ;;  %v1950_v49 = vld [vmem:[%s2476_s6 + $0x84] sm:$0xf]  ;;  %v1612_v55 = vld [vmem:[%s2476_s6 + $0x188] sm:$0xf0]  ;;  %v2012_v56 = vld [vmem:[%s2476_s6 + $0x274] sm:$0xf] }
  0x69   : > { %1116 = vmatpush.bf16.msrb.mxu0 %v1675_v8  ;;  %v1508_v8 = vld [vmem:[%s2476_s6 + $0xb8] sm:$0xf0]  ;;  %v1966_v51 = vld [vmem:[%s2476_s6 + $0x104] sm:$0xf]  ;;  %v2044_v61 = vld [vmem:[%s2476_s6 + $0x374] sm:$0xf]  ;;  %v1487_v0 = vor.u32 %v1950_v49, %v1484_v50 }
  0x6a   : > { %1129 = vmatpush.bf16.msrb.mxu1 %v1739_v13  ;;  %v1636_v13 = vld [vmem:[%s2476_s6 + $0x1b8] sm:$0xf0]  ;;  %v1511_v15 = vor.u32 %v1956_v6, %v1508_v8  ;;  %v2010_v8 = vld [vmem:[%s2476_s6 + $0x264] sm:$0xf]  ;;  %v1724_v10 = vld [vmem:[%s2476_s6 + $0x268] sm:$0xf0] }
  0x6b   : > { %1142 = vmatpush.bf16.msrb.mxu2 %v1803_v14  ;;  %v1447_v14 = vor.u32 %v1940_v4, %v1444_v5  ;;  %v1639_v22 = vor.u32 %v1988_v12, %v1636_v13  ;;  %v1732_v57 = vld [vmem:[%s2476_s6 + $0x278] sm:$0xf0]  ;;  %v2026_v11 = vld [vmem:[%s2476_s6 + $0x2e4] sm:$0xf]  ;;  %v1788_v13 = vld [vmem:[%s2476_s6 + $0x2e8] sm:$0xf0] }
  0x6c   : > { %1155 = vmatpush.bf16.msrb.mxu3 %v1867_v20  ;;  %1117 = vmatmul.bf16.vlgmr.msrb.gmra.mxu0 %v2640_v37  ;;  %v1436_v20 = vld [vmem:[%s2476_s6 + $0x28] sm:$0xf0]  ;;  %v1796_v60 = vld [vmem:[%s2476_s6 + $0x2f8] sm:$0xf0]  ;;  %v1735_v5 = vor.u32 %v2012_v56, %v1732_v57  ;;  %v2022_v36 = vld [vmem:[%s2476_s6 + $0x2c4] sm:$0xf] }
  0x6d   : > { %1161 = vmatpush.bf16.msra.mxu0 %v1479_v21  ;;  %1130 = vmatmul.bf16.vlgmr.msrb.gmra.mxu1 %v2644_v40  ;;  %v1954_v21 = vld [vmem:[%s2476_s6 + $0xa4] sm:$0xf]  ;;  %v1439_v28 = vor.u32 %v1938_v19, %v1436_v20  ;;  %v1860_v62 = vld [vmem:[%s2476_s6 + $0x378] sm:$0xf0]  ;;  %v1916_v19 = vld [vmem:[%s2476_s6 + $0x3e8] sm:$0xf0]  ;;  %v1727_v20 = vor.u32 %v2010_v8, %v1724_v10 }
  0x6e   : > { %1174 = vmatpush.bf16.msra.mxu1 %v1543_v25  ;;  %1143 = vmatmul.bf16.vlgmr.msrb.gmra.mxu2 %v2636_v34  ;;  %v1564_v25 = vld [vmem:[%s2476_s6 + $0x128] sm:$0xf0]  ;;  %v1503_v29 = vor.u32 %v1954_v21, %v1500_v23  ;;  %v1791_v21 = vor.u32 %v2026_v11, %v1788_v13  ;;  %v2008_v23 = vld [vmem:[%s2476_s6 + $0x254] sm:$0xf]  ;;  %v1908_v31 = vld [vmem:[%s2476_s6 + $0x3d8] sm:$0xf0] }
  0x6f   : > { %1187 = vmatpush.bf16.msra.mxu2 %v1607_v26  ;;  %1156 = vmatmul.bf16.vlgmr.msrb.gmra.mxu3 %v2642_v38  ;;  %v1986_v26 = vld [vmem:[%s2476_s6 + $0x1a4] sm:$0xf]  ;;  %v2020_v49 = vld [vmem:[%s2476_s6 + $0x2b4] sm:$0xf]  ;;  %v1684_v10 = vld [vmem:[%s2476_s6 + $0x218] sm:$0xf0] }
  0x70   : > { %1200 = vmatpush.bf16.msra.mxu3 %v1671_v30  ;;  %v1567_v30 = vor.u32 %v1970_v24, %v1564_v25  ;;  %v1631_v35 = vor.u32 %v1986_v26, %v1628_v27  ;;  %v1716_v24 = vld [vmem:[%s2476_s6 + $0x258] sm:$0xf0]  ;;  %v2024_v25 = vld [vmem:[%s2476_s6 + $0x2d4] sm:$0xf]  ;;  %s2248_s15 = sshra.s32 %s1286_s19, 4  ;;  %s2254_s30 = scalar_lea.hbm %s2818_s3, 32  ;;  %s2249_s15 = int_to_ptr.hbm [resolvable:$true] %s2248_s15 }
  0x71   : > { %1162 = vmatpush.bf16.msra.mxu0 %v1471_v39  ;;  %v1968_v39 = vld [vmem:[%s2476_s6 + $0x114] sm:$0xf]  ;;  %v1780_v27 = vld [vmem:[%s2476_s6 + $0x2d8] sm:$0xf0]  ;;  %v1719_v32 = vor.u32 %v2008_v23, %v1716_v24  ;;  %v1998_v23 = vld [vmem:[%s2476_s6 + $0x204] sm:$0xf]  ;;  %p2255_p10 = scmp.lt.s32.totalorder %s2249_s15, %s2818_s3 }
  0x72   : > { %1175 = vmatpush.bf16.msra.mxu1 %v1535_v41  ;;  %v1556_v41 = vld [vmem:[%s2476_s6 + $0x118] sm:$0xf0]  ;;  %v2000_v8 = vld [vmem:[%s2476_s6 + $0x214] sm:$0xf]  ;;  %v1676_v24 = vld [vmem:[%s2476_s6 + $0x208] sm:$0xf0] }
  0x73   : > { %1188 = vmatpush.bf16.msra.mxu2 %v1599_v42  ;;  %v1984_v42 = vld [vmem:[%s2476_s6 + $0x194] sm:$0xf]  ;;  %v1559_v48 = vor.u32 %v1968_v39, %v1556_v41  ;;  %v1772_v41 = vld [vmem:[%s2476_s6 + $0x2c8] sm:$0xf0]  ;;  %v1748_v13 = vld [vmem:[%s2476_s6 + $0x298] sm:$0xf0] }
  0x74   : > { %1201 = vmatpush.bf16.msra.mxu3 %v1663_v46  ;;  %v1420_v46 = vld [vmem:[%s2476_s6 + $0x8] sm:$0xf0]  ;;  %v2016_v11 = vld [vmem:[%s2476_s6 + $0x294] sm:$0xf]  ;;  %s2250_s26 = scalar_lea.hbm %s2249_s15, 16 }
  0x75   : > { %1163 = vmatpush.bf16.msra.mxu0 %v1463_v52  ;;  %v1623_v52 = vor.u32 %v1984_v42, %v1620_v43  ;;  %v1423_v59 = vor.u32 %v1934_v45, %v1420_v46  ;;  %v1836_v42 = vld [vmem:[%s2476_s6 + $0x348] sm:$0xf0]  ;;  %v2054_v43 = vld [vmem:[%s2476_s6 + $0x3c4] sm:$0xf]  ;;  %v1775_v45 = vor.u32 %v2022_v36, %v1772_v41  ;;  %v411_v41 = vld [vmem:[%s235_s11] sm:$0x3]  ;;  %p2251_p7 = scmp.ne.s32.totalorder %s2249_s15, %s2250_s26  ;;  %p2256_p11 = scmp.lt.s32.totalorder %s2254_s30, %s2250_s26 }
  0x76   : > { %1176 = vmatpush.bf16.msra.mxu1 %v1527_v53  ;;  %v1548_v53 = vld [vmem:[%s2476_s6 + $0x108] sm:$0xf0] }
  0x77   : > { %1189 = vmatpush.bf16.msra.mxu2 %v1591_v54  ;;  %v1982_v54 = vld [vmem:[%s2476_s6 + $0x184] sm:$0xf]  ;;  %p2252_p8 = pnand %p2251_p7, %p2436_p0  ;;  %p2257_p12 = por %p2256_p11, %p2255_p10 }
  0x78   : > { %1202 = vmatpush.bf16.msra.mxu3 %v1655_v58  ;;  %v2028_v58 = vld [vmem:[%s2476_s6 + $0x2f4] sm:$0xf]  ;;  %v1615_v4 = vor.u32 %v1982_v54, %v1612_v55  ;;  %v1892_v55 = vld [vmem:[%s2476_s6 + $0x3b8] sm:$0xf0] }
  0x79   : > { %1164 = vmatpush.bf16.msra.mxu0 %v1455_v1  ;;  %v1551_v1 = vor.u32 %v1966_v51, %v1548_v53  ;;  %v1799_v6 = vor.u32 %v2028_v58, %v1796_v60  ;;  %v1764_v51 = vld [vmem:[%s2476_s6 + $0x2b8] sm:$0xf0]  ;;  %v2052_v54 = vld [vmem:[%s2476_s6 + $0x3b4] sm:$0xf]  ;;  %v1692_v60 = vld [vmem:[%s2476_s6 + $0x228] sm:$0xf0]  ;;  %p2253_p9 = pneg %p2252_p8 }
  0x7a   : > { %1177 = vmatpush.bf16.msra.mxu1 %v1519_v2  ;;  %v2060_v2 = vld [vmem:[%s2476_s6 + $0x3f4] sm:$0xf]  ;;  %v1828_v53 = vld [vmem:[%s2476_s6 + $0x338] sm:$0xf0]  ;;  %v1767_v57 = vor.u32 %v2020_v49, %v1764_v51 }
  0x7b   : > { %1190 = vmatpush.bf16.msra.mxu2 %v1583_v3  ;;  %v1924_v3 = vld [vmem:[%s2476_s6 + $0x3f8] sm:$0xf0]  ;;  %p2258_p13 = pnand %p2257_p12, %p2253_p9 }
  0x7c   : > { %1203 = vmatpush.bf16.msra.mxu3 %v1647_v7  ;;  %v1863_v7 = vor.u32 %v2044_v61, %v1860_v62  ;;  %v1927_v12 = vor.u32 %v2060_v2, %v1924_v3  ;;  %v2018_v61 = vld [vmem:[%s2476_s6 + $0x2a4] sm:$0xf]  ;;  %v1895_v62 = vor.u32 %v2052_v54, %v1892_v55  ;;  %v1820_v2 = vld [vmem:[%s2476_s6 + $0x328] sm:$0xf0] }
  0x7d   : > { %1165 = vmatpush.bf16.msra.mxu0 %v1447_v14  ;;  %v2042_v14 = vld [vmem:[%s2476_s6 + $0x364] sm:$0xf] }
  0x7e   : > { %1178 = vmatpush.bf16.msra.mxu1 %v1511_v15  ;;  %v1852_v15 = vld [vmem:[%s2476_s6 + $0x368] sm:$0xf0]  ;;  %v2050_v3 = vld [vmem:[%s2476_s6 + $0x3a4] sm:$0xf] }
  0x7f   : > { %1191 = vmatpush.bf16.msra.mxu2 %v1575_v18  ;;  %v2058_v18 = vld [vmem:[%s2476_s6 + $0x3e4] sm:$0xf] }
  0x80   : > { %1204 = vmatpush.bf16.msra.mxu3 %v1639_v22  ;;  %v1855_v22 = vor.u32 %v2042_v14, %v1852_v15  ;;  %v1919_v26 = vor.u32 %v2058_v18, %v1916_v19  ;;  %v2032_v14 = vld [vmem:[%s2476_s6 + $0x314] sm:$0xf]  ;;  %v1812_v15 = vld [vmem:[%s2476_s6 + $0x318] sm:$0xf0] }
  0x81   : > { %1166 = vmatpush.bf16.msra.mxu0 %v1439_v28  ;;  %v2040_v28 = vld [vmem:[%s2476_s6 + $0x354] sm:$0xf]  ;;  %v1876_v19 = vld [vmem:[%s2476_s6 + $0x398] sm:$0xf0] }
  0x82   : > { %1179 = vmatpush.bf16.msra.mxu1 %v1503_v29  ;;  %v1844_v29 = vld [vmem:[%s2476_s6 + $0x358] sm:$0xf0]  ;;  %v2048_v18 = vld [vmem:[%s2476_s6 + $0x394] sm:$0xf] }
  0x83   : > { %1192 = vmatpush.bf16.msra.mxu2 %v1567_v30  ;;  %v2056_v30 = vld [vmem:[%s2476_s6 + $0x3d4] sm:$0xf]  ;;  %v1847_v33 = vor.u32 %v2040_v28, %v1844_v29  ;;  %v2030_v28 = vld [vmem:[%s2476_s6 + $0x304] sm:$0xf]  ;;  %v1804_v29 = vld [vmem:[%s2476_s6 + $0x308] sm:$0xf0] }
  0x84   : > { %1205 = vmatpush.bf16.msra.mxu3 %v1631_v35  ;;  %v2006_v35 = vld [vmem:[%s2476_s6 + $0x244] sm:$0xf]  ;;  %v1911_v39 = vor.u32 %v2056_v30, %v1908_v31  ;;  %v1868_v31 = vld [vmem:[%s2476_s6 + $0x388] sm:$0xf0] }
  0x85   : > { %1167 = vmatpush.bf16.msra.mxu0 %v1431_v44  ;;  %v2046_v30 = vld [vmem:[%s2476_s6 + $0x384] sm:$0xf] }
  0x86   : > { %1180 = vmatpush.bf16.msra.mxu1 %v1495_v47  ;;  %v2004_v47 = vld [vmem:[%s2476_s6 + $0x234] sm:$0xf] }
  0x87   : > { %1193 = vmatpush.bf16.msra.mxu2 %v1559_v48  ;;  %v1700_v48 = vld [vmem:[%s2476_s6 + $0x238] sm:$0xf0] }
  0x88   : > { %1206 = vmatpush.bf16.msra.mxu3 %v1623_v52  ;;  %v2036_v52 = vld [vmem:[%s2476_s6 + $0x334] sm:$0xf]  ;;  %v1703_v56 = vor.u32 %v2004_v47, %v1700_v48 }
  0x89   : > { %1168 = vmatpush.bf16.msra.mxu0 %v1423_v59  ;;  %v1831_v58 = vor.u32 %v2036_v52, %v1828_v53  ;;  %v2002_v59 = vld [vmem:[%s2476_s6 + $0x224] sm:$0xf] }
  0x8a   : > { %1181 = vmatpush.bf16.msra.mxu1 %v1487_v0  ;;  %v1756_v0 = vld [vmem:[%s2476_s6 + $0x2a8] sm:$0xf0] }
  0x8b   : > { %1194 = vmatpush.bf16.msra.mxu2 %v1551_v1  ;;  %v2034_v1 = vld [vmem:[%s2476_s6 + $0x324] sm:$0xf] }
  0x8c   : > { %1207 = vmatpush.bf16.msra.mxu3 %v1615_v4  ;;  %1169 = vmatmul.bf16.vlgmr.msra.gmra.mxu0 %v2576_v9  ;;  %v2038_v9 = vld [vmem:[%s2476_s6 + $0x344] sm:$0xf]  ;;  %v1884_v4 = vld [vmem:[%s2476_s6 + $0x3a8] sm:$0xf0] }
  0x8d   : > { %1213 = vmatpush.bf16.msrb.mxu0 %v1735_v5  ;;  %1182 = vmatmul.bf16.vlgmr.msra.gmra.mxu1 %v2583_v17  ;;  %v1900_v17 = vld [vmem:[%s2476_s6 + $0x3c8] sm:$0xf0]  ;;  %v1839_v46 = vor.u32 %v2038_v9, %v1836_v42  ;;  %v1695_v5 = vor.u32 %v2002_v59, %v1692_v60  ;;  %v413_v9 = vperm.slane %v411_v41, 0 }
  0x8e   : > { %1226 = vmatpush.bf16.msrb.mxu1 %v1799_v6  ;;  %1195 = vmatmul.bf16.vlgmr.msra.gmra.mxu2 %v2568_v63  ;;  %v1783_v63 = vor.u32 %v2024_v25, %v1780_v27  ;;  %v1903_v50 = vor.u32 %v2054_v43, %v1900_v17  ;;  %v1759_v6 = vor.u32 %v2018_v61, %v1756_v0  ;;  %v2014_v25 = vld [vmem:[%s2476_s6 + $0x284] sm:$0xf]  ;;  %v1740_v27 = vld [vmem:[%s2476_s6 + $0x288] sm:$0xf0] }
  0x8f   : > { %1239 = vmatpush.bf16.msrb.mxu2 %v1863_v7  ;;  %1208 = vmatmul.bf16.vlgmr.msra.gmra.mxu3 %v2581_v16  ;;  %v1708_v16 = vld [vmem:[%s2476_s6 + $0x248] sm:$0xf0]  ;;  %v1823_v7 = vor.u32 %v2034_v1, %v1820_v2  ;;  %v414_v1 = vperm.slane %v411_v41, 1 }
  0x90   : > { %1252 = vmatpush.bf16.msrb.mxu3 %v1927_v12  ;;  %v1711_v44 = vor.u32 %v2006_v35, %v1708_v16  ;;  %v1887_v12 = vor.u32 %v2050_v3, %v1884_v4  ;;  %v1871_v35 = vor.u32 %v2046_v30, %v1868_v31 }
  0x91   : > { %1214 = vmatpush.bf16.msrb.mxu0 %v1727_v20  ;;  %v1687_v20 = vor.u32 %v2000_v8, %v1684_v10 }
  0x92   : > { %1227 = vmatpush.bf16.msrb.mxu1 %v1791_v21  ;;  %v1751_v21 = vor.u32 %v2016_v11, %v1748_v13 }
  0x93   : > { %1240 = vmatpush.bf16.msrb.mxu2 %v1855_v22  ;;  %v1815_v22 = vor.u32 %v2032_v14, %v1812_v15 }
  0x94   : > { %1253 = vmatpush.bf16.msrb.mxu3 %v1919_v26  ;;  %v1879_v26 = vor.u32 %v2048_v18, %v1876_v19 }
  0x95   : > { %1215 = vmatpush.bf16.msrb.mxu0 %v1719_v32  ;;  %v1679_v32 = vor.u32 %v1998_v23, %v1676_v24 }
  0x96   : > { %1228 = vmatpush.bf16.msrb.mxu1 %v1783_v63  ;;  %v1743_v63 = vor.u32 %v2014_v25, %v1740_v27 }
  0x97   : > { %1241 = vmatpush.bf16.msrb.mxu2 %v1847_v33  ;;  %v1807_v33 = vor.u32 %v2030_v28, %v1804_v29 }
  0x98   : > { %1254 = vmatpush.bf16.msrb.mxu3 %v1911_v39 }
  0x99   : > { %1216 = vmatpush.bf16.msrb.mxu0 %v1711_v44 }
  0x9a   : > { %1229 = vmatpush.bf16.msrb.mxu1 %v1775_v45 }
  0x9b   : > { %1242 = vmatpush.bf16.msrb.mxu2 %v1839_v46 }
  0x9c   : > { %1255 = vmatpush.bf16.msrb.mxu3 %v1903_v50 }
  0x9d   : > { %1217 = vmatpush.bf16.msrb.mxu0 %v1703_v56 }
  0x9e   : > { %1230 = vmatpush.bf16.msrb.mxu1 %v1767_v57 }
  0x9f   : > { %1243 = vmatpush.bf16.msrb.mxu2 %v1831_v58 }
  0xa0   : > { %1256 = vmatpush.bf16.msrb.mxu3 %v1895_v62 }
  0xa1   : > { %1218 = vmatpush.bf16.msrb.mxu0 %v1695_v5 }
  0xa2   : > { %1231 = vmatpush.bf16.msrb.mxu1 %v1759_v6 }
  0xa3   : > { %1244 = vmatpush.bf16.msrb.mxu2 %v1823_v7 }
  0xa4   : > { %1257 = vmatpush.bf16.msrb.mxu3 %v1887_v12 }
  0xa5   : > { %1219 = vmatpush.bf16.msrb.mxu0 %v1687_v20 }
  0xa6   : > { %1232 = vmatpush.bf16.msrb.mxu1 %v1751_v21 }
  0xa7   : > { %1245 = vmatpush.bf16.msrb.mxu2 %v1815_v22 }
  0xa8   : > { %1258 = vmatpush.bf16.msrb.mxu3 %v1879_v26 }
  0xa9   : > { %1220 = vmatpush.bf16.msrb.mxu0 %v1679_v32 }
  0xaa   : > { %1233 = vmatpush.bf16.msrb.mxu1 %v1743_v63 }
  0xab   : > { %1246 = vmatpush.bf16.msrb.mxu2 %v1807_v33 }
  0xac   : > { %1259 = vmatpush.bf16.msrb.mxu3 %v1871_v35  ;;  %1221 = vmatmul.bf16.vlgmr.msrb.gmra.mxu0 %v2640_v37 }
  0xad   : > { %1234 = vmatmul.bf16.vlgmr.msrb.gmra.mxu1 %v2644_v40 }
  0xae   : > { %1247 = vmatmul.bf16.vlgmr.msrb.gmra.mxu2 %v2636_v34 }
  0xaf   : > { %1260 = vmatmul.bf16.vlgmr.msrb.gmra.mxu3 %v2642_v38 }
  0xc9   : > { %v1066_v16 = vpop.f32.mrf.mxu0 }
  0xca   : > { %v1079_v36 = vpop.f32.mrf.mxu1  ;;  %v1067_v17 = vadd.f32 %v1066_v16, %v413_v9 }
  0xcc   : > { %v1080_v37 = vadd.f32 %v1079_v36, %v1067_v17 }
  0xd1   : > { %v1092_v39 = vpop.f32.mrf.mxu2  ;;  %v1068_v43 = vpop.f32.mrf.mxu0 }
  0xd2   : > { %v1105_v42 = vpop.f32.mrf.mxu3  ;;  %v1081_v44 = vpop.f32.mrf.mxu1  ;;  %v1093_v40 = vadd.f32 %v1092_v39, %v1080_v37 }
  0xd4   : > { %v1106_v47 = vadd.f32 %v1105_v42, %v1093_v40 }
  0xd9   : > { %v1094_v45 = vpop.f32.mrf.mxu2 }
  0xda   : > { %v1107_v46 = vpop.f32.mrf.mxu3 }
  0xe9   : > { %v1118_v34 = vpop.f32.mrf.mxu0 }
  0xea   : > { %v1119_v48 = vadd.f32 %v1118_v34, %v1106_v47  ;;  %v1131_v38 = vpop.f32.mrf.mxu1 }
  0xec   : > { %v1132_v49 = vadd.f32 %v1131_v38, %v1119_v48 }
  0xf1   : > { %v1144_v50 = vpop.f32.mrf.mxu2  ;;  %v1120_v54 = vpop.f32.mrf.mxu0 }
  0xf2   : > { %v1145_v51 = vadd.f32 %v1144_v50, %v1132_v49  ;;  %v1157_v52 = vpop.f32.mrf.mxu3  ;;  %v1133_v55 = vpop.f32.mrf.mxu1 }
  0xf4   : > { %v1158_v53 = vadd.f32 %v1157_v52, %v1145_v51 }
  0xf6   : > { %1265 = vst [vmem:[%s2772_s28] sm:$0xff] %v1158_v53 }
  0xf9   : > { %v1146_v56 = vpop.f32.mrf.mxu2 }
  0xfa   : > { %v1159_v57 = vpop.f32.mrf.mxu3 }
 0x109   : > { %v1170_v58 = vpop.f32.mrf.mxu0 }
 0x10a   : > { %v1183_v59 = vpop.f32.mrf.mxu1  ;;  %v1171_v4 = vadd.f32 %v1170_v58, %v414_v1 }
 0x10c   : > { %v1184_v5 = vadd.f32 %v1183_v59, %v1171_v4 }
 0x111   : > { %v1196_v60 = vpop.f32.mrf.mxu2  ;;  %v1172_v62 = vpop.f32.mrf.mxu0 }
 0x112   : > { %v1209_v61 = vpop.f32.mrf.mxu3  ;;  %v1185_v0 = vpop.f32.mrf.mxu1  ;;  %v1197_v6 = vadd.f32 %v1196_v60, %v1184_v5 }
 0x114   : > { %v1210_v7 = vadd.f32 %v1209_v61, %v1197_v6 }
 0x119   : > { %v1198_v2 = vpop.f32.mrf.mxu2 }
 0x11a   : > { %v1211_v3 = vpop.f32.mrf.mxu3 }
 0x129   : > { %v1222_v8 = vpop.f32.mrf.mxu0 }
 0x12a   : > { %v1235_v10 = vpop.f32.mrf.mxu1  ;;  %v1223_v11 = vadd.f32 %v1222_v8, %v1210_v7 }
 0x12c   : > { %v1236_v12 = vadd.f32 %v1235_v10, %v1223_v11 }
 0x131   : > { %v1248_v13 = vpop.f32.mrf.mxu2  ;;  %v1224_v18 = vpop.f32.mrf.mxu0 }
 0x132   : > { %v1249_v14 = vadd.f32 %v1248_v13, %v1236_v12  ;;  %v1261_v15 = vpop.f32.mrf.mxu3  ;;  %v1237_v19 = vpop.f32.mrf.mxu1 }
 0x134   : > { %v1262_v20 = vadd.f32 %v1261_v15, %v1249_v14 }
 0x136   : > { %1266 = vst [vmem:[%s2772_s28 + $0x8] sm:$0xff] %v1262_v20 }
 0x137   : > { %2261 = shalt.err (!%p2258_p13)
}
 0x138   : > { %2071 = dma.vmem_to_hbm [thread:$0]  (%p2436_p0), %s1284_s10, 256, %s1286_s19, %s1268_s24  }
 0x139   : > { %v1250_v21 = vpop.f32.mrf.mxu2 }
 0x13a   : > { %v1263_v22 = vpop.f32.mrf.mxu3 }
 0x13b PF: > { %s1297_s29 = sand.u32 1, %s2300_s12   ;;  %p2085_p4 = pnand %p1405_p3, %p2440_p2 }
 0x13c   : > { %s1298_s11 = scalar_lea.sflag [#allocation4], %s1297_s29 }
 0x13d   : > { %p2086_p5 = pneg %p2085_p4 }
 0x13f   : > { %2295 = dma.done.wait (%p2086_p5), %s1298_s11, 256  }
 0x140   : > { %2297 = vsyncadd (%p2086_p5), %s1298_s11, 4294967040  ;;  %s20_s17 = sadd.s32 1, %s2320_s17   ;;  %s2825_s12 = smov %s2304_s13 }
 0x141   : > { %p17_p1 = scmp.ge.s32.totalorder %s20_s17, 4   ;;  %s2826_s13 = smov %s2308_s14 }
 0x142   : > { %s2827_s14 = smov %s2398_s25  ;;  %s2828_s15 = smov %s2316_s16 }
 0x143   : > { %s2829_s16 = smov %s2831_s18  ;;  %19 = sbr.rel (!%p17_p1) target bundleno = 7 (0x7), region = 94 }
 0x148   :  { %1304 = vsyncpa [#allocation3], 1 }
 0x149   :  { %1306 = vsyncpa [#allocation3 + $0x1], 1 }
 0x14a   :  { %1307 = vsyncpa [#allocation6], 1 }
 0x14b   :  { %1309 = vsyncpa [#allocation6 + $0x1], 1 }
 0x14c   :  { %1310 = vsyncpa [#allocation4], 1 }
 0x14d   :  { %1312 = vsyncpa [#allocation4 + $0x1], 1 }

</bundles_post_ra>
